<compile_context>
chip_gen: v5e
topology: v5e:2x2
jax: 0.10.0
libtpu: 0.0.40
codegen_flags: <defaults>
</compile_context>

<pallas_src>
import functools

import jax
import jax.numpy as jnp
from jax.experimental import pallas as pl
from jax.experimental.pallas import tpu as pltpu


# ----------------------------- kernels --------------------------------------


def _rmsnorm_kernel(x_ref, gain_ref, o_ref, *, eps):
    # Compute in float32 regardless of I/O dtype (matches x.to(torch.float32)).
    x = x_ref[...].astype(jnp.float32)              # (row_tile, D)
    g = gain_ref[...].astype(jnp.float32)           # (1, D)
    ms = jnp.mean(x * x, axis=-1, keepdims=True)    # lane reduction -> XLU
    inv_rms = jax.lax.rsqrt(ms + eps)               # transcendental -> EUP
    o_ref[...] = (x * inv_rms * g).astype(o_ref.dtype)


def _rmsnorm_packed_kernel(x_ref, gain_ref, seg_ref, o_ref, *, eps, d_model):
    # Each 128-lane physical row holds 128//d_model logical rows. The
    # block-diagonal 0/1 matrix `seg` computes every group's sum of squares
    # AND broadcasts it back to each lane of the group in one MXU matmul.
    x = x_ref[...].astype(jnp.float32)              # (row_tile, 128)
    g = gain_ref[...].astype(jnp.float32)           # (1, 128) = tiled gain
    seg = seg_ref[...]                              # (128, 128) block-diag 1s
    ss = jnp.dot(x * x, seg,
                 preferred_element_type=jnp.float32,
                 precision=jax.lax.Precision.HIGHEST)
    inv_rms = jax.lax.rsqrt(ss * (1.0 / d_model) + eps)
    o_ref[...] = (x * inv_rms * g).astype(o_ref.dtype)


# ----------------------------- tiling helpers --------------------------------


def _default_vmem_limit():
    """Per-generation VMEM limit: 75% of physical (96 MiB v5e/v6e, 48 MiB v7x)."""
    cap = None
    try:
        cap = int(pltpu.get_tpu_info().vmem_capacity_bytes)
    except Exception:
        cap = None
    if not cap or cap <= 0:
        cap = 64 * 1024 * 1024          # conservative fallback (v7x physical)
    return (cap * 3) // 4


def _pick_row_tile(rows, lanes, io_dtype, vmem_limit_bytes):
    """Largest row tile that fits the VMEM budget, with a >=8-step grid target."""
    if rows <= 8:
        return int(rows)                 # block == full sublane dim (allowed)
    dtype_bytes = jnp.dtype(io_dtype).itemsize
    # Double-buffered input + output blocks in the I/O dtype plus ~2 f32-sized
    # temporaries inside the kernel body.
    per_row = lanes * (4 * dtype_bytes + 2 * 4)
    budget = int(vmem_limit_bytes * 0.6)   # headroom for Mosaic scratch/sems
    tile = max(budget // per_row, 8)
    tile = min(tile, 1024)                 # 512-1024 rows already ~HBM roofline
    # Aim for >= 8 grid steps (>= 4 per TensorCore on v7x) so the pipeline
    # reaches steady state, but never shrink below 256 rows to chase steps.
    steps_cap = (rows // 8 // 16) * 16
    if steps_cap >= 256:
        tile = min(tile, steps_cap)
    tile = max((tile // 16) * 16, 8)        # bf16 sublane packing
    tile = min(tile, (rows // 8) * 8)       # sublane dim: multiple of 8
    return int(tile)


def _launch(kernel, x2, const_inputs, const_specs, row_tile, vmem_limit_bytes):
    rows, lanes = x2.shape
    if row_tile is None:
        row_tile = _pick_row_tile(rows, lanes, x2.dtype, vmem_limit_bytes)
    num_steps = pl.cdiv(rows, row_tile)

    x_spec = pl.BlockSpec((row_tile, lanes), lambda i: (i, 0))
    if row_tile < 256 and num_steps >= 4:
        # Large d_model under the v7x VMEM budget can force small tiles;
        # deeper buffering keeps the DMA queues full (latency -> bandwidth).
        try:
            x_spec = pl.BlockSpec((row_tile, lanes), lambda i: (i, 0),
                                  pipeline_mode=pl.Buffered(3))
        except TypeError:
            pass  # older jax without pipeline_mode: fall back to default depth

    return pl.pallas_call(
        kernel,
        out_shape=jax.ShapeDtypeStruct((rows, lanes), x2.dtype),
        grid_spec=pltpu.PrefetchScalarGridSpec(
            num_scalar_prefetch=0,
            grid=(num_steps,),
            in_specs=[x_spec] + list(const_specs),
            out_specs=pl.BlockSpec((row_tile, lanes), lambda i: (i, 0)),
        ),
        compiler_params=pltpu.CompilerParams(
            dimension_semantics=("parallel",),
            vmem_limit_bytes=int(vmem_limit_bytes),
        ),
    )(x2, *const_inputs)


# ----------------------------- public wrapper --------------------------------


def rmsnorm(x, gain, eps=1e-5, *, row_tile=None, vmem_limit_bytes=None):
    """x: (batch, seq, d_model), gain: (d_model,). Returns same shape/dtype."""
    B, S, D = x.shape
    rows = B * S
    if vmem_limit_bytes is None:
        vmem_limit_bytes = _default_vmem_limit()

    if D >= 128:
        # Lane-dense path (block last dim == full D, so any D is legal; for
        # best store utilization D should be a multiple of 128).
        x2 = x.reshape(rows, D)
        gain2 = gain.reshape(1, D)
        out2 = _launch(
            functools.partial(_rmsnorm_kernel, eps=eps),
            x2,
            const_inputs=(gain2,),
            const_specs=[pl.BlockSpec((1, D), lambda i: (0, 0))],
            row_tile=row_tile,
            vmem_limit_bytes=vmem_limit_bytes,
        )
        return out2.reshape(B, S, D)

    pack = 128 // D if D > 0 else 0
    if pack > 0 and 128 % D == 0 and rows % pack == 0 and rows >= pack:
        # Packed small-D path: fold `pack` logical rows into one 128-lane row
        # (contiguous, free reshape) so stores stay lane-dense.
        x2 = x.reshape(rows // pack, 128)
        gain2 = jnp.tile(gain, pack).reshape(1, 128)
        groups = jnp.arange(128, dtype=jnp.int32) // D
        seg = (groups[:, None] == groups[None, :]).astype(jnp.float32)
        out2 = _launch(
            functools.partial(_rmsnorm_packed_kernel, eps=eps, d_model=D),
            x2,
            const_inputs=(gain2, seg),
            const_specs=[pl.BlockSpec((1, 128), lambda i: (0, 0)),
                         pl.BlockSpec((128, 128), lambda i: (0, 0))],
            row_tile=row_tile,
            vmem_limit_bytes=vmem_limit_bytes,
        )
        return out2.reshape(B, S, D)

    # TODO(synk): odd small d_model (does not divide 128, or row count not a
    # multiple of the pack factor) falls back to plain XLA; a masked-store
    # Pallas path exists but is not worth the 25%-lane-utilization stores.
    xf = x.astype(jnp.float32)
    inv = jax.lax.rsqrt(jnp.mean(xf * xf, axis=-1, keepdims=True) + eps)
    return (xf * inv * gain.astype(jnp.float32)).astype(x.dtype)


def _reference(x, gain, eps):
    xf = x.astype(jnp.float32)
    r = xf / jnp.sqrt(jnp.mean(xf * xf, axis=-1, keepdims=True) + eps)
    return (r * gain.astype(jnp.float32)).astype(x.dtype)


if __name__ == "__main__":
    eps = 1e-5
    key = jax.random.PRNGKey(0)
    k1, k2, k3 = jax.random.split(key, 3)

    # Case 1: lane-dense d_model (multiple of 128), rows divide the tile.
    B1, S1, D1 = 4, 64, 128
    x1 = jax.random.normal(k1, (B1, S1, D1), dtype=jnp.float32)
    g1 = 1.0 + 0.01 * jnp.arange(D1, dtype=jnp.float32)
    o1 = jax.block_until_ready(rmsnorm(x1, g1, eps))
    r1 = _reference(x1, g1, eps)
    assert o1.shape == x1.shape and o1.dtype == x1.dtype
    assert float(jnp.max(jnp.abs(o1 - r1))) < 1e-5

    # Case 2: ragged row count (rows % row_tile != 0) -> partial final block
    # handled in-kernel by Pallas (no wrapper pad/slice HBM copies).
    B2, S2, D2 = 3, 7, 128
    x2 = jax.random.normal(k2, (B2, S2, D2), dtype=jnp.float32)
    g2 = jnp.ones((D2,), dtype=jnp.float32)
    o2 = jax.block_until_ready(rmsnorm(x2, g2, eps))
    r2 = _reference(x2, g2, eps)
    assert o2.shape == x2.shape and o2.dtype == x2.dtype
    assert float(jnp.max(jnp.abs(o2 - r2))) < 1e-5

    # Case 3: small d_model (32) -> packed 128-lane kernel (4 logical rows per
    # physical row, segmented sum-of-squares via block-diagonal MXU matmul).
    B3, S3, D3 = 4, 16, 32
    x3 = jax.random.normal(k3, (B3, S3, D3), dtype=jnp.float32)
    g3 = 1.0 - 0.02 * jnp.arange(D3, dtype=jnp.float32)
    o3 = jax.block_until_ready(rmsnorm(x3, g3, eps))
    r3 = _reference(x3, g3, eps)
    assert o3.shape == x3.shape and o3.dtype == x3.dtype
    assert float(jnp.max(jnp.abs(o3 - r3))) < 1e-4

    print("KERNEL_OK")
</pallas_src>

<mosaic_0001>
module attributes {stable_mosaic.version = 11 : i64} {
  func.func @_rmsnorm_kernel(%arg0: i32, %arg1: memref<256x128xf32, #tpu.memory_space<vmem>>, %arg2: memref<1x128xf32, #tpu.memory_space<vmem>>, %arg3: memref<256x128xf32, #tpu.memory_space<vmem>>) attributes {dimension_semantics = [#tpu.dimension_semantics<parallel>], iteration_bounds = array<i64: 1>, scalar_prefetch = 0 : i64, scratch_operands = 0 : i64, tpu.core_type = #tpu.core_type<tc>, window_params = [{transform_indices = @transform_0, window_bounds = array<i64: 256, 128>}, {pipeline_mode = #tpu.pipeline_mode<synchronous>, transform_indices = @transform_1, window_bounds = array<i64: 1, 128>}, {transform_indices = @transform_2, window_bounds = array<i64: 256, 128>}]} {
    %c0 = arith.constant 0 : index
    %c0_0 = arith.constant 0 : index
    %0 = vector.load %arg1[%c0, %c0_0] : memref<256x128xf32, #tpu.memory_space<vmem>>, vector<256x128xf32>
    %c0_1 = arith.constant 0 : index
    %c0_2 = arith.constant 0 : index
    %1 = vector.load %arg2[%c0_1, %c0_2] : memref<1x128xf32, #tpu.memory_space<vmem>>, vector<1x128xf32>
    %2 = arith.mulf %0, %0 : vector<256x128xf32>
    %cst = arith.constant dense<0.000000e+00> : vector<256xf32>
    %3 = vector.multi_reduction <add>, %2, %cst [1] : vector<256x128xf32> to vector<256xf32>
    %4 = vector.shape_cast %3 : vector<256xf32> to vector<256x1xf32>
    %cst_3 = arith.constant 1.280000e+02 : f32
    %5 = vector.broadcast %cst_3 : f32 to vector<256x1xf32>
    %6 = arith.divf %4, %5 : vector<256x1xf32>
    %cst_4 = arith.constant 9.99999974E-6 : f32
    %7 = vector.broadcast %cst_4 : f32 to vector<256x1xf32>
    %8 = arith.addf %6, %7 : vector<256x1xf32>
    %9 = math.rsqrt %8 : vector<256x1xf32>
    %10 = vector.broadcast %9 : vector<256x1xf32> to vector<256x128xf32>
    %11 = arith.mulf %0, %10 : vector<256x128xf32>
    %12 = vector.broadcast %1 : vector<1x128xf32> to vector<256x128xf32>
    %13 = arith.mulf %11, %12 : vector<256x128xf32>
    %c0_5 = arith.constant 0 : index
    %c0_6 = arith.constant 0 : index
    %14 = vector.load %arg3[%c0_5, %c0_6] : memref<256x128xf32, #tpu.memory_space<vmem>>, vector<256x128xf32>
    tpu.vector_store %arg3[%c0_5, %c0_6], %13 {strides = array<i32>} : memref<256x128xf32, #tpu.memory_space<vmem>>, vector<256x128xf32>,
    return
  }
  func.func @transform_0(%arg0: i32) -> (i32, i32) {
    %c0_i32 = arith.constant 0 : i32
    %c0_i32_0 = arith.constant 0 : i32
    return %arg0, %c0_i32 : i32, i32
  }
  func.func @transform_1(%arg0: i32) -> (i32, i32) {
    %c0_i32 = arith.constant 0 : i32
    %c0_i32_0 = arith.constant 0 : i32
    %c0_i32_1 = arith.constant 0 : i32
    return %c0_i32, %c0_i32_0 : i32, i32
  }
  func.func @transform_2(%arg0: i32) -> (i32, i32) {
    %c0_i32 = arith.constant 0 : i32
    %c0_i32_0 = arith.constant 0 : i32
    return %arg0, %c0_i32 : i32, i32
  }
}

</mosaic_0001>

<bundles_post_ra>
// kernel: tpu_custom_call.1
= control target key start
LH: loop header
LB: loop body
LE: loop exit
PB: predicated region body
PF: predicated region fallthrough
CT: control target
= control target key end

     0   :  { %7 = vsyncpa [#allocation3], 0  ;;  %s1432_s0 = inlined_call_operand.hbm [shape: f32[256,128], index: 0, kind: input, shape index: {}]   ;;  %s1433_s1 = inlined_call_operand.hbm [shape: f32[1,128], index: 1, kind: input, shape index: {}]   ;;  %s1434_s2 = inlined_call_operand.hbm [shape: f32[256,128], index: 2, kind: output, shape index: {}]  }
   0x1   :  { %8 = vsyncpa [#allocation6], 0 }
   0x2   :  { %9 = vsyncpa [#allocation4], 0  ;;  %s14_s11 = sshll.u32 %s1432_s0, 4  ;;  %s838_s12 = smov [#allocation2]   ;;  %s15_s11 = int_to_ptr.hbm [resolvable:$true] %s14_s11 }
   0x3   :  { %s16_s13 = sshll.u32 %s838_s12, 4  ;;  %s28_s16 = sshll.u32 %s1433_s1, 4  ;;  %s17_s13 = int_to_ptr.vmem [resolvable:$true] %s16_s13  ;;  %s29_s16 = int_to_ptr.hbm [resolvable:$true] %s28_s16 }
   0x4   :  { %s839_s17 = smov 128   ;;  %s840_s18 = smov 8  }
   0x5   :  { %22 = dma.hbm_to_vmem [thread:$0]  %s15_s11, 4096, %s17_s13, [#allocation3], %s839_s17, %s839_s17, %s840_s18  }
   0x6   :  { %s841_s19 = smov [#allocation5]  }
   0x7   :  { %s30_s20 = sshll.u32 %s841_s19, 4  ;;  %s31_s20 = int_to_ptr.vmem [resolvable:$true] %s30_s20 }
   0x8   :  { %33 = dma.hbm_to_vmem [thread:$0]  %s29_s16, 16, %s31_s20, [#allocation6]  }
   0x9   :  { %832 = dma.done.wait [#allocation3], 4096  }
   0xa   :  { %833 = vsyncadd [#allocation3], 4294963200 }
   0xb   :  { %834 = dma.done.wait [#allocation6], 16  }
   0xc   :  { %835 = vsyncadd [#allocation6], 4294967280  ;;  %v868_v0 = vld [vmem:[#allocation2 + $0x20] sm:$0xff]  ;;  %v870_v1 = vld [vmem:[#allocation2 + $0x10] sm:$0xff]  ;;  %s843_s0 = smov [#allocation7]   ;;  %s667_s23 = sshll.u32 %s1434_s2, 4  ;;  %s668_s23 = int_to_ptr.hbm [resolvable:$true] %s667_s23 }
   0xd   :  { %v872_v2 = vld [vmem:[#allocation2] sm:$0xff]  ;;  %v79_v3 = vmul.f32 %v868_v0, %v868_v0  ;;  %v77_v4 = vmul.f32 %v870_v1, %v870_v1  ;;  %v880_v6 = vld [vmem:[#allocation2 + $0x28] sm:$0xff]  ;;  %v882_v7 = vld [vmem:[#allocation2 + $0x18] sm:$0xff]  ;;  %s665_s1 = sshll.u32 %s843_s0, 4  ;;  %s666_s1 = int_to_ptr.vmem [resolvable:$true] %s665_s1 }
   0xe   :  { %v75_v5 = vmul.f32 %v872_v2, %v872_v2  ;;  %v884_v8 = vld [vmem:[#allocation2 + $0x8] sm:$0xff]  ;;  %v80_v9 = vmul.f32 %v880_v6, %v880_v6  ;;  %v78_v10 = vmul.f32 %v882_v7, %v882_v7  ;;  %v892_v12 = vld [vmem:[#allocation2 + $0x40] sm:$0xff]  ;;  %v894_v13 = vld [vmem:[#allocation2 + $0x38] sm:$0xff] }
   0xf   :  { %115 = vadd.xlane.f32.xlu2 %v79_v3  ;;  %111 = vadd.xlane.f32.xlu1 %v77_v4  ;;  %v76_v11 = vmul.f32 %v884_v8, %v884_v8  ;;  %v896_v14 = vld [vmem:[#allocation2 + $0x30] sm:$0xff]  ;;  %v83_v15 = vmul.f32 %v892_v12, %v892_v12  ;;  %v82_v16 = vmul.f32 %v894_v13, %v894_v13  ;;  %v904_v18 = vld [vmem:[#allocation2 + $0x58] sm:$0xff]  ;;  %v908_v20 = vld [vmem:[#allocation2 + $0x48] sm:$0xff]  ;;  %v842_v3 = vmov 128.0  }
  0x10   :  { %107 = vadd.xlane.f32.xlu0 %v75_v5  ;;  %v81_v17 = vmul.f32 %v896_v14, %v896_v14  ;;  %v906_v19 = vld [vmem:[#allocation2 + $0x50] sm:$0xff]  ;;  %v86_v21 = vmul.f32 %v904_v18, %v904_v18  ;;  %v84_v23 = vmul.f32 %v908_v20, %v908_v20  ;;  %v918_v25 = vld [vmem:[#allocation2 + $0x68] sm:$0xff]  ;;  %v920_v26 = vld [vmem:[#allocation2 + $0x60] sm:$0xff]  ;;  %688 = vrcp.f32 %v842_v3 }
  0x11   :  { %v85_v22 = vmul.f32 %v906_v19, %v906_v19  ;;  %v916_v24 = vld [vmem:[#allocation2 + $0x70] sm:$0xff]  ;;  %v88_v28 = vmul.f32 %v918_v25, %v918_v25  ;;  %v87_v29 = vmul.f32 %v920_v26, %v920_v26  ;;  %v928_v30 = vld [vmem:[#allocation2 + $0x88] sm:$0xff]  ;;  %v930_v31 = vld [vmem:[#allocation2 + $0x80] sm:$0xff] }
  0x12   :  { %v89_v27 = vmul.f32 %v916_v24, %v916_v24  ;;  %v932_v32 = vld [vmem:[#allocation2 + $0x78] sm:$0xff]  ;;  %v92_v33 = vmul.f32 %v928_v30, %v928_v30  ;;  %v91_v34 = vmul.f32 %v930_v31, %v930_v31  ;;  %v940_v36 = vld [vmem:[#allocation2 + $0xa0] sm:$0xff]  ;;  %v944_v38 = vld [vmem:[#allocation2 + $0x90] sm:$0xff] }
  0x13   :  { %v90_v35 = vmul.f32 %v932_v32, %v932_v32  ;;  %v942_v37 = vld [vmem:[#allocation2 + $0x98] sm:$0xff]  ;;  %v95_v39 = vmul.f32 %v940_v36, %v940_v36  ;;  %v93_v41 = vmul.f32 %v944_v38, %v944_v38  ;;  %v954_v43 = vld [vmem:[#allocation2 + $0xb0] sm:$0xff]  ;;  %v956_v44 = vld [vmem:[#allocation2 + $0xa8] sm:$0xff] }
  0x14   :  { %v94_v40 = vmul.f32 %v942_v37, %v942_v37  ;;  %v952_v42 = vld [vmem:[#allocation2 + $0xb8] sm:$0xff]  ;;  %v97_v46 = vmul.f32 %v954_v43, %v954_v43  ;;  %v96_v47 = vmul.f32 %v956_v44, %v956_v44  ;;  %v964_v48 = vld [vmem:[#allocation2 + $0xd0] sm:$0xff]  ;;  %v966_v49 = vld [vmem:[#allocation2 + $0xc8] sm:$0xff] }
  0x15   :  { %v98_v45 = vmul.f32 %v952_v42, %v952_v42  ;;  %v66_v50 = vld [vmem:[#allocation2 + $0xc0] sm:$0xff]  ;;  %v101_v51 = vmul.f32 %v964_v48, %v964_v48  ;;  %v100_v52 = vmul.f32 %v966_v49, %v966_v49  ;;  %v71_v54 = vld [vmem:[#allocation2 + $0xe8] sm:$0xff]  ;;  %v69_v56 = vld [vmem:[#allocation2 + $0xd8] sm:$0xff] }
  0x16   :  { %v99_v53 = vmul.f32 %v66_v50, %v66_v50  ;;  %v70_v55 = vld [vmem:[#allocation2 + $0xe0] sm:$0xff]  ;;  %v104_v57 = vmul.f32 %v71_v54, %v71_v54  ;;  %v102_v59 = vmul.f32 %v69_v56, %v69_v56  ;;  %v73_v60 = vld [vmem:[#allocation2 + $0xf8] sm:$0xff]  ;;  %v72_v61 = vld [vmem:[#allocation2 + $0xf0] sm:$0xff]  ;;  %v689_v4 = vpop.eup %688 }
  0x17   :  { %117 = vadd.xlane.f32.xlu2 %v80_v9  ;;  %113 = vadd.xlane.f32.xlu1 %v78_v10  ;;  %v103_v58 = vmul.f32 %v70_v55, %v70_v55  ;;  %v106_v62 = vmul.f32 %v73_v60, %v73_v60  ;;  %v105_v63 = vmul.f32 %v72_v61, %v72_v61  ;;  %v172_v5 = vmul.f32 128.0, %v689_v4 }
  0x18   :  { %109 = vadd.xlane.f32.xlu0 %v76_v11  ;;  %vm176_vm0 = vweird.f32 %v689_v4 }
  0x19   :  { %v173_v9 = vsub.f32 1.0, %v172_v5 }
  0x1b   :  { %v174_v10 = vmul.f32 %v689_v4, %v173_v9 }
  0x1d   :  { %v175_v11 = vadd.f32 %v689_v4, %v174_v10 }
  0x1f   :  { %123 = vadd.xlane.f32.xlu2 %v83_v15  ;;  %121 = vadd.xlane.f32.xlu1 %v82_v16  ;;  %v972_v15 = vsel %vm176_vm0, %v689_v4, %v175_v11 }
  0x20   :  { %119 = vadd.xlane.f32.xlu0 %v81_v17 }
  0x27   :  { %129 = vadd.xlane.f32.xlu2 %v86_v21  ;;  %127 = vadd.xlane.f32.xlu1 %v85_v22 }
  0x28   :  { %125 = vadd.xlane.f32.xlu0 %v84_v23 }
  0x2f   :  { %135 = vadd.xlane.f32.xlu2 %v89_v27  ;;  %133 = vadd.xlane.f32.xlu1 %v88_v28 }
  0x30   :  { %131 = vadd.xlane.f32.xlu0 %v87_v29 }
  0x37   :  { %141 = vadd.xlane.f32.xlu2 %v92_v33  ;;  %139 = vadd.xlane.f32.xlu1 %v91_v34 }
  0x38   :  { %137 = vadd.xlane.f32.xlu0 %v90_v35 }
  0x3f   :  { %147 = vadd.xlane.f32.xlu2 %v95_v39  ;;  %145 = vadd.xlane.f32.xlu1 %v94_v40 }
  0x40   :  { %143 = vadd.xlane.f32.xlu0 %v93_v41 }
  0x47   :  { %153 = vadd.xlane.f32.xlu2 %v98_v45  ;;  %151 = vadd.xlane.f32.xlu1 %v97_v46 }
  0x48   :  { %149 = vadd.xlane.f32.xlu0 %v96_v47 }
  0x4f   :  { %159 = vadd.xlane.f32.xlu2 %v101_v51  ;;  %157 = vadd.xlane.f32.xlu1 %v100_v52 }
  0x50   :  { %155 = vadd.xlane.f32.xlu0 %v99_v53 }
  0x57   :  { %165 = vadd.xlane.f32.xlu2 %v104_v57  ;;  %163 = vadd.xlane.f32.xlu1 %v103_v58 }
  0x58   :  { %161 = vadd.xlane.f32.xlu0 %v102_v59 }
  0x5f   :  { %169 = vadd.xlane.f32.xlu1 %v106_v62 }
  0x60   :  { %167 = vadd.xlane.f32.xlu0 %v105_v63 }
  0x82   :  { %v116_v16 = vpop.xlane.xlu2 %115  ;;  %v112_v17 = vpop.xlane.xlu1 %111 }
  0x83   :  { %v182_v21 = vmul.f32 %v972_v15, %v116_v16  ;;  %v180_v22 = vmul.f32 %v972_v15, %v112_v17  ;;  %v108_v23 = vpop.xlane.xlu0 %107 }
  0x84   :  { %v178_v27 = vmul.f32 %v972_v15, %v108_v23 }
  0x85   :  { %v214_v28 = vadd.f32 1e-05, %v182_v21  ;;  %v212_v29 = vadd.f32 1e-05, %v180_v22 }
  0x86   :  { %v977_v33 = vadd.f32 1e-05, %v178_v27 }
  0x87   :  { %690 = vrsqrt.f32 %v214_v28  ;;  %vm288_vm1 = vweird.f32 %v214_v28  ;;  %vm268_vm2 = vweird.f32 %v212_v29 }
  0x88   :  { %692 = vrsqrt.f32 %v212_v29  ;;  %vm248_vm4 = vweird.f32 %v977_v33 }
  0x89   :  { %694 = vrsqrt.f32 %v977_v33 }
  0x8a   :  { %v118_v34 = vpop.xlane.xlu2 %117  ;;  %v114_v35 = vpop.xlane.xlu1 %113 }
  0x8b   :  { %v183_v39 = vmul.f32 %v972_v15, %v118_v34  ;;  %v181_v40 = vmul.f32 %v972_v15, %v114_v35  ;;  %v110_v41 = vpop.xlane.xlu0 %109  ;;  %v1007_v35 = vld [vmem:[#allocation5] ss:$0 sm:$0xff] }
  0x8c   :  { %v179_v45 = vmul.f32 %v972_v15, %v110_v41 }
  0x8d   :  { %v691_v46 = vpop.eup %690  ;;  %v983_v47 = vadd.f32 1e-05, %v183_v39  ;;  %v985_v50 = vadd.f32 1e-05, %v181_v40 }
  0x8e   :  { %v693_v51 = vpop.eup %692  ;;  %v283_v52 = vmul.f32 %v691_v46, %v214_v28  ;;  %v987_v53 = vadd.f32 1e-05, %v179_v45  ;;  %vm289_vm3 = vweird.f32 %v691_v46 }
  0x8f   :  { %v695_v54 = vpop.eup %694  ;;  %v263_v55 = vmul.f32 %v693_v51, %v212_v29  ;;  %696 = vrsqrt.f32 %v983_v47  ;;  %vm269_vm5 = vweird.f32 %v693_v51  ;;  %vm298_vm6 = vweird.f32 %v983_v47  ;;  %vm290_vm8 = vmor %vm288_vm1, %vm289_vm3 }
  0x90   :  { %v284_v56 = vmul.f32 %v691_v46, %v283_v52  ;;  %v243_v57 = vmul.f32 %v695_v54, %v977_v33  ;;  %698 = vrsqrt.f32 %v985_v50  ;;  %vm249_vm7 = vweird.f32 %v695_v54  ;;  %vm270_vm10 = vmor %vm268_vm2, %vm269_vm5 }
  0x91   :  { %v264_v58 = vmul.f32 %v693_v51, %v263_v55  ;;  %700 = vrsqrt.f32 %v987_v53  ;;  %vm278_vm9 = vweird.f32 %v985_v50  ;;  %vm250_vm11 = vmor %vm248_vm4, %vm249_vm7  ;;  %vm258_vm0 = vweird.f32 %v987_v53 }
  0x92   :  { %v285_v59 = vmul.f32 0.5, %v284_v56  ;;  %v244_v60 = vmul.f32 %v695_v54, %v243_v57  ;;  %v124_v61 = vpop.xlane.xlu2 %123  ;;  %v122_v62 = vpop.xlane.xlu1 %121 }
  0x93   :  { %v265_v63 = vmul.f32 0.5, %v264_v58  ;;  %v186_v3 = vmul.f32 %v972_v15, %v124_v61  ;;  %v185_v4 = vmul.f32 %v972_v15, %v122_v62  ;;  %v120_v5 = vpop.xlane.xlu0 %119 }
  0x94   :  { %v286_v9 = vsub.f32 1.5, %v285_v59  ;;  %v245_v10 = vmul.f32 0.5, %v244_v60 }
  0x95   :  { %v996_v11 = vpop.eup %696  ;;  %v266_v16 = vsub.f32 1.5, %v265_v63  ;;  %v999_v17 = vadd.f32 1e-05, %v186_v3  ;;  %v1015_v41 = vadd.f32 1e-05, %v185_v4 }
  0x96   :  { %v1001_v21 = vpop.eup %698  ;;  %v287_v22 = vmul.f32 %v691_v46, %v286_v9  ;;  %v246_v23 = vsub.f32 1.5, %v245_v10  ;;  %v293_v27 = vmul.f32 %v996_v11, %v983_v47  ;;  %vm299_vm12 = vweird.f32 %v996_v11 }
  0x97   :  { %v1005_v34 = vpop.eup %700  ;;  %v267_v39 = vmul.f32 %v693_v51, %v266_v16  ;;  %v273_v40 = vmul.f32 %v1001_v21, %v985_v50  ;;  %702 = vrsqrt.f32 %v999_v17  ;;  %vm279_vm13 = vweird.f32 %v1001_v21  ;;  %vm300_vm15 = vmor %vm298_vm6, %vm299_vm12 }
  0x98   :  { %v291_v45 = vsel %vm290_vm8, %v691_v46, %v287_v22  ;;  %v247_v52 = vmul.f32 %v695_v54, %v246_v23  ;;  %v294_v55 = vmul.f32 %v996_v11, %v293_v27  ;;  %v253_v28 = vmul.f32 %v1005_v34, %v987_v53  ;;  %vm280_vm1 = vmor %vm278_vm9, %vm279_vm13 }
  0x99   :  { %v566_v56 = vmul.f32 %v291_v45, %v868_v0  ;;  %v271_v57 = vsel %vm270_vm10, %v693_v51, %v267_v39  ;;  %v274_v58 = vmul.f32 %v1001_v21, %v273_v40  ;;  %v184_v46 = vmul.f32 %v972_v15, %v120_v5 }
  0x9a   :  { %v564_v29 = vmul.f32 %v271_v57, %v870_v1  ;;  %v251_v59 = vsel %vm250_vm11, %v695_v54, %v247_v52  ;;  %v295_v60 = vmul.f32 0.5, %v294_v55  ;;  %v254_v61 = vmul.f32 %v1005_v34, %v253_v28  ;;  %v130_v62 = vpop.xlane.xlu2 %129  ;;  %v128_v63 = vpop.xlane.xlu1 %127 }
  0x9b   :  { %v601_v3 = vmul.f32 %v1007_v35, %v566_v56  ;;  %v562_v0 = vmul.f32 %v251_v59, %v872_v2  ;;  %v275_v33 = vmul.f32 0.5, %v274_v58  ;;  %v126_v51 = vpop.xlane.xlu0 %125  ;;  %704 = vrsqrt.f32 %v1015_v41 }
  0x9c   :  { %v599_v4 = vmul.f32 %v1007_v35, %v564_v29  ;;  %v296_v9 = vsub.f32 1.5, %v295_v60  ;;  %v255_v5 = vmul.f32 0.5, %v254_v61  ;;  %v1039_v16 = vadd.f32 1e-05, %v184_v46 }
  0x9d   :  { %v1035_v1 = vpop.eup %702  ;;  %633 = vst [vmem:[#allocation7 + $0x20] sm:$0xff] %v601_v3  ;;  %v597_v54 = vmul.f32 %v1007_v35, %v562_v0  ;;  %v276_v10 = vsub.f32 1.5, %v275_v33  ;;  %vm259_vm14 = vweird.f32 %v1005_v34  ;;  %v189_v39 = vmul.f32 %v972_v15, %v130_v62 }
  0x9e   :  { %631 = vst [vmem:[#allocation7 + $0x10] sm:$0xff] %v599_v4  ;;  %v297_v2 = vmul.f32 %v996_v11, %v296_v9  ;;  %v256_v22 = vsub.f32 1.5, %v255_v5  ;;  %v323_v23 = vmul.f32 %v1035_v1, %v999_v17  ;;  %706 = vrsqrt.f32 %v1039_v16  ;;  %vm260_vm2 = vmor %vm258_vm0, %vm259_vm14 }
  0x9f   :  { %629 = vst [vmem:[#allocation7] sm:$0xff] %v597_v54  ;;  %v277_v27 = vmul.f32 %v1001_v21, %v276_v10  ;;  %v188_v47 = vmul.f32 %v972_v15, %v128_v63  ;;  %v1063_v53 = vadd.f32 1e-05, %v189_v39  ;;  %vm328_vm3 = vweird.f32 %v999_v17 }
  0xa0   :  { %v301_v40 = vsel %vm300_vm15, %v996_v11, %v297_v2  ;;  %v257_v45 = vmul.f32 %v1005_v34, %v256_v22  ;;  %v324_v52 = vmul.f32 %v1035_v1, %v323_v23  ;;  %v187_v11 = vmul.f32 %v972_v15, %v126_v51 }
  0xa1   :  { %v567_v55 = vmul.f32 %v301_v40, %v880_v6  ;;  %v281_v28 = vsel %vm280_vm1, %v1001_v21, %v277_v27  ;;  %v1066_v56 = vpop.eup %704  ;;  %v1070_v46 = vadd.f32 1e-05, %v188_v47  ;;  %vm329_vm4 = vweird.f32 %v1035_v1 }
  0xa2   :  { %v565_v50 = vmul.f32 %v281_v28, %v882_v7  ;;  %v261_v57 = vsel %vm260_vm2, %v1005_v34, %v257_v45  ;;  %v325_v58 = vmul.f32 0.5, %v324_v52  ;;  %v136_v29 = vpop.xlane.xlu2 %135  ;;  %v134_v6 = vpop.xlane.xlu1 %133  ;;  %v313_v60 = vmul.f32 %v1066_v56, %v1015_v41  ;;  %vm330_vm5 = vmor %vm328_vm3, %vm329_vm4 }
  0xa3   :  { %v602_v21 = vmul.f32 %v1007_v35, %v567_v55  ;;  %v563_v59 = vmul.f32 %v261_v57, %v884_v8  ;;  %v132_v61 = vpop.xlane.xlu0 %131  ;;  %708 = vrsqrt.f32 %v1063_v53  ;;  %v1085_v33 = vadd.f32 1e-05, %v187_v11 }
  0xa4   :  { %v600_v62 = vmul.f32 %v1007_v35, %v565_v50  ;;  %v326_v7 = vsub.f32 1.5, %v325_v58  ;;  %v707_v34 = vpop.eup %706  ;;  %v314_v3 = vmul.f32 %v1066_v56, %v313_v60  ;;  %710 = vrsqrt.f32 %v1070_v46 }
  0xa5   :  { %634 = vst [vmem:[#allocation7 + $0x28] sm:$0xff] %v602_v21  ;;  %v598_v63 = vmul.f32 %v1007_v35, %v563_v59  ;;  %v303_v0 = vmul.f32 %v707_v34, %v1039_v16  ;;  %v192_v4 = vmul.f32 %v972_v15, %v136_v29  ;;  %v191_v9 = vmul.f32 %v972_v15, %v134_v6 }
  0xa6   :  { %632 = vst [vmem:[#allocation7 + $0x18] sm:$0xff] %v600_v62  ;;  %v327_v8 = vmul.f32 %v1035_v1, %v326_v7  ;;  %v315_v51 = vmul.f32 0.5, %v314_v3  ;;  %v190_v5 = vmul.f32 %v972_v15, %v132_v61  ;;  %vm319_vm6 = vweird.f32 %v1066_v56 }
  0xa7   :  { %630 = vst [vmem:[#allocation7 + $0x8] sm:$0xff] %v598_v63  ;;  %v304_v10 = vmul.f32 %v707_v34, %v303_v0  ;;  %712 = vrsqrt.f32 %v1085_v33  ;;  %v1096_v23 = vadd.f32 1e-05, %v192_v4  ;;  %v1098_v17 = vadd.f32 1e-05, %v191_v9 }
  0xa8   :  { %v331_v54 = vsel %vm330_vm5, %v1035_v1, %v327_v8  ;;  %v316_v22 = vsub.f32 1.5, %v315_v51  ;;  %vm318_vm7 = vweird.f32 %v1015_v41  ;;  %vm308_vm8 = vweird.f32 %v1039_v16 }
  0xa9   :  { %v570_v2 = vmul.f32 %v331_v54, %v892_v12  ;;  %v1100_v27 = vpop.eup %708  ;;  %v305_v39 = vmul.f32 0.5, %v304_v10  ;;  %v1110_v52 = vadd.f32 1e-05, %v190_v5  ;;  %vm320_vm9 = vmor %vm318_vm7, %vm319_vm6  ;;  %vm309_vm10 = vweird.f32 %v707_v34 }
  0xaa   :  { %v1104_v1 = vpop.eup %710  ;;  %v317_v45 = vmul.f32 %v1066_v56, %v316_v22  ;;  %v353_v12 = vmul.f32 %v1100_v27, %v1063_v53  ;;  %v142_v47 = vpop.xlane.xlu2 %141  ;;  %714 = vrsqrt.f32 %v1096_v23  ;;  %vm358_vm11 = vweird.f32 %v1063_v53  ;;  %vm310_vm13 = vmor %vm308_vm8, %vm309_vm10 }
  0xab   :  { %v605_v40 = vmul.f32 %v1007_v35, %v570_v2  ;;  %v140_v55 = vpop.xlane.xlu1 %139  ;;  %v306_v41 = vsub.f32 1.5, %v305_v39  ;;  %v343_v28 = vmul.f32 %v1104_v1, %v1070_v46  ;;  %v138_v11 = vpop.xlane.xlu0 %137  ;;  %716 = vrsqrt.f32 %v1098_v17 }
  0xac   :  { %v321_v50 = vsel %vm320_vm9, %v1066_v56, %v317_v45  ;;  %v354_v57 = vmul.f32 %v1100_v27, %v353_v12  ;;  %vm348_vm12 = vweird.f32 %v1070_v46  ;;  %vm359_vm14 = vweird.f32 %v1100_v27 }
  0xad   :  { %637 = vst [vmem:[#allocation7 + $0x40] sm:$0xff] %v605_v40  ;;  %v1121_v58 = vpop.eup %712  ;;  %v569_v29 = vmul.f32 %v321_v50, %v894_v13  ;;  %v307_v6 = vmul.f32 %v707_v34, %v306_v41  ;;  %v344_v21 = vmul.f32 %v1104_v1, %v343_v28  ;;  %vm338_vm15 = vweird.f32 %v1085_v33  ;;  %vm360_vm3 = vmor %vm358_vm11, %vm359_vm14 }
  0xae   :  { %v355_v59 = vmul.f32 0.5, %v354_v57  ;;  %v333_v56 = vmul.f32 %v1121_v58, %v1085_v33  ;;  %718 = vrsqrt.f32 %v1110_v52  ;;  %vm349_vm0 = vweird.f32 %v1104_v1 }
  0xaf   :  { %v604_v13 = vmul.f32 %v1007_v35, %v569_v29  ;;  %v311_v60 = vsel %vm310_vm13, %v707_v34, %v307_v6  ;;  %v345_v61 = vmul.f32 0.5, %v344_v21  ;;  %v195_v63 = vmul.f32 %v972_v15, %v142_v47  ;;  %vm350_vm6 = vmor %vm348_vm12, %vm349_vm0 }
  0xb0   :  { %v568_v62 = vmul.f32 %v311_v60, %v896_v14  ;;  %v356_v16 = vsub.f32 1.5, %v355_v59  ;;  %v334_v7 = vmul.f32 %v1121_v58, %v333_v56  ;;  %v1138_v3 = vpop.eup %714  ;;  %vm339_vm1 = vweird.f32 %v1121_v58 }
  0xb1   :  { %636 = vst [vmem:[#allocation7 + $0x38] sm:$0xff] %v604_v13  ;;  %v346_v8 = vsub.f32 1.5, %v345_v61  ;;  %vm388_vm2 = vweird.f32 %v1096_v23  ;;  %v194_v34 = vmul.f32 %v972_v15, %v140_v55  ;;  %v1143_v0 = vpop.eup %716  ;;  %v383_v9 = vmul.f32 %v1138_v3, %v1096_v23  ;;  %vm340_vm8 = vmor %vm338_vm15, %vm339_vm1 }
  0xb2   :  { %v603_v51 = vmul.f32 %v1007_v35, %v568_v62  ;;  %v357_v14 = vmul.f32 %v1100_v27, %v356_v16  ;;  %v335_v4 = vmul.f32 0.5, %v334_v7  ;;  %vm389_vm4 = vweird.f32 %v1138_v3  ;;  %v148_v45 = vpop.xlane.xlu2 %147 }
  0xb3   :  { %v347_v5 = vmul.f32 %v1104_v1, %v346_v8  ;;  %v373_v54 = vmul.f32 %v1143_v0, %v1098_v17  ;;  %vm378_vm5 = vweird.f32 %v1098_v17  ;;  %v193_v10 = vmul.f32 %v972_v15, %v138_v11  ;;  %v146_v12 = vpop.xlane.xlu1 %145  ;;  %v144_v28 = vpop.xlane.xlu0 %143  ;;  %vm390_vm10 = vmor %vm388_vm2, %vm389_vm4 }
  0xb4   :  { %v1159_v2 = vpop.eup %718  ;;  %635 = vst [vmem:[#allocation7 + $0x30] sm:$0xff] %v603_v51  ;;  %v361_v22 = vsel %vm360_vm3, %v1100_v27, %v357_v14  ;;  %v336_v53 = vsub.f32 1.5, %v335_v4  ;;  %v384_v39 = vmul.f32 %v1138_v3, %v383_v9  ;;  %v1167_v40 = vadd.f32 1e-05, %v195_v63 }
  0xb5   :  { %v573_v47 = vmul.f32 %v361_v22, %v904_v18  ;;  %v351_v55 = vsel %vm350_vm6, %v1104_v1, %v347_v5  ;;  %v374_v41 = vmul.f32 %v1143_v0, %v373_v54  ;;  %v363_v27 = vmul.f32 %v1159_v2, %v1110_v52 }
  0xb6   :  { %v572_v46 = vmul.f32 %v351_v55, %v906_v19  ;;  %v337_v11 = vmul.f32 %v1121_v58, %v336_v53  ;;  %v385_v50 = vmul.f32 0.5, %v384_v39  ;;  %vm379_vm7 = vweird.f32 %v1143_v0 }
  0xb7   :  { %v608_v57 = vmul.f32 %v1007_v35, %v573_v47  ;;  %v375_v18 = vmul.f32 0.5, %v374_v41  ;;  %v364_v1 = vmul.f32 %v1159_v2, %v363_v27  ;;  %720 = vrsqrt.f32 %v1167_v40  ;;  %vm380_vm11 = vmor %vm378_vm5, %vm379_vm7 }
  0xb8   :  { %v607_v29 = vmul.f32 %v1007_v35, %v572_v46  ;;  %v341_v19 = vsel %vm340_vm8, %v1121_v58, %v337_v11  ;;  %v386_v6 = vsub.f32 1.5, %v385_v50  ;;  %vm369_vm9 = vweird.f32 %v1159_v2 }
  0xb9   :  { %640 = vst [vmem:[#allocation7 + $0x58] sm:$0xff] %v608_v57  ;;  %v571_v21 = vmul.f32 %v341_v19, %v908_v20  ;;  %v376_v59 = vsub.f32 1.5, %v375_v18  ;;  %v365_v56 = vmul.f32 0.5, %v364_v1  ;;  %v1188_v13 = vadd.f32 1e-05, %v194_v34 }
  0xba   :  { %639 = vst [vmem:[#allocation7 + $0x50] sm:$0xff] %v607_v29  ;;  %v387_v33 = vmul.f32 %v1138_v3, %v386_v6  ;;  %v1191_v60 = vadd.f32 1e-05, %v193_v10  ;;  %v198_v61 = vmul.f32 %v972_v15, %v148_v45  ;;  %v197_v62 = vmul.f32 %v972_v15, %v146_v12  ;;  %v154_v14 = vpop.xlane.xlu2 %153 }
  0xbb   :  { %v606_v58 = vmul.f32 %v1007_v35, %v571_v21  ;;  %v377_v20 = vmul.f32 %v1143_v0, %v376_v59  ;;  %v366_v16 = vsub.f32 1.5, %v365_v56  ;;  %722 = vrsqrt.f32 %v1188_v13  ;;  %v152_v4 = vpop.xlane.xlu1 %151 }
  0xbc   :  { %v391_v7 = vsel %vm390_vm10, %v1138_v3, %v387_v33  ;;  %vm368_vm12 = vweird.f32 %v1110_v52  ;;  %724 = vrsqrt.f32 %v1191_v60  ;;  %v1212_v51 = vadd.f32 1e-05, %v198_v61 }
  0xbd   :  { %v721_v63 = vpop.eup %720  ;;  %638 = vst [vmem:[#allocation7 + $0x48] sm:$0xff] %v606_v58  ;;  %v576_v23 = vmul.f32 %v391_v7, %v916_v24  ;;  %v381_v8 = vsel %vm380_vm11, %v1143_v0, %v377_v20  ;;  %v367_v34 = vmul.f32 %v1159_v2, %v366_v16  ;;  %vm370_vm13 = vmor %vm368_vm12, %vm369_vm9  ;;  %v1218_v52 = vadd.f32 1e-05, %v197_v62  ;;  %v150_v0 = vpop.xlane.xlu0 %149 }
  0xbe   :  { %v575_v3 = vmul.f32 %v381_v8, %v918_v25  ;;  %v413_v17 = vmul.f32 %v721_v63, %v1167_v40  ;;  %726 = vrsqrt.f32 %v1212_v51  ;;  %v196_v22 = vmul.f32 %v972_v15, %v144_v28 }
  0xbf   :  { %v611_v9 = vmul.f32 %v1007_v35, %v576_v23  ;;  %v371_v24 = vsel %vm370_vm13, %v1159_v2, %v367_v34  ;;  %728 = vrsqrt.f32 %v1218_v52  ;;  %v201_v53 = vmul.f32 %v972_v15, %v154_v14 }
  0xc0   :  { %v610_v5 = vmul.f32 %v1007_v35, %v575_v3  ;;  %v574_v25 = vmul.f32 %v371_v24, %v920_v26  ;;  %v414_v54 = vmul.f32 %v721_v63, %v413_v17  ;;  %v200_v39 = vmul.f32 %v972_v15, %v152_v4 }
  0xc1   :  { %v1226_v10 = vpop.eup %722  ;;  %643 = vst [vmem:[#allocation7 + $0x70] sm:$0xff] %v611_v9  ;;  %vm418_vm14 = vweird.f32 %v1167_v40  ;;  %vm408_vm15 = vweird.f32 %v1188_v13  ;;  %v1240_v55 = vadd.f32 1e-05, %v196_v22  ;;  %v1242_v41 = vadd.f32 1e-05, %v201_v53 }
  0xc2   :  { %v1231_v2 = vpop.eup %724  ;;  %642 = vst [vmem:[#allocation7 + $0x68] sm:$0xff] %v610_v5  ;;  %v609_v45 = vmul.f32 %v1007_v35, %v574_v25  ;;  %v415_v12 = vmul.f32 0.5, %v414_v54  ;;  %v403_v26 = vmul.f32 %v1226_v10, %v1188_v13  ;;  %vm419_vm0 = vweird.f32 %v721_v63  ;;  %v160_v20 = vpop.xlane.xlu2 %159 }
  0xc3   :  { %v393_v47 = vmul.f32 %v1231_v2, %v1191_v60  ;;  %v1245_v46 = vadd.f32 1e-05, %v200_v39  ;;  %vm398_vm1 = vweird.f32 %v1191_v60  ;;  %vm448_vm2 = vweird.f32 %v1212_v51  ;;  %vm420_vm3 = vmor %vm418_vm14, %vm419_vm0  ;;  %v158_v61 = vpop.xlane.xlu1 %157 }
  0xc4   :  { %641 = vst [vmem:[#allocation7 + $0x60] sm:$0xff] %v609_v45  ;;  %v416_v27 = vsub.f32 1.5, %v415_v12  ;;  %v404_v28 = vmul.f32 %v1226_v10, %v403_v26  ;;  %v1247_v11 = vpop.eup %726  ;;  %730 = vrsqrt.f32 %v1240_v55  ;;  %v199_v19 = vmul.f32 %v972_v15, %v150_v0 }
  0xc5   :  { %v394_v50 = vmul.f32 %v1231_v2, %v393_v47  ;;  %v1253_v57 = vpop.eup %728  ;;  %v443_v29 = vmul.f32 %v1247_v11, %v1212_v51  ;;  %vm409_vm4 = vweird.f32 %v1226_v10  ;;  %vm438_vm5 = vweird.f32 %v1218_v52  ;;  %v1270_v16 = vpop.xlane.xlu0 %155 }
  0xc6   :  { %v417_v18 = vmul.f32 %v721_v63, %v416_v27  ;;  %v405_v1 = vmul.f32 0.5, %v404_v28  ;;  %v433_v21 = vmul.f32 %v1253_v57, %v1218_v52  ;;  %732 = vrsqrt.f32 %v1242_v41  ;;  %vm410_vm8 = vmor %vm408_vm15, %vm409_vm4 }
  0xc7   :  { %v395_v6 = vmul.f32 0.5, %v394_v50  ;;  %v444_v33 = vmul.f32 %v1247_v11, %v443_v29  ;;  %734 = vrsqrt.f32 %v1245_v46  ;;  %vm399_vm6 = vweird.f32 %v1231_v2 }
  0xc8   :  { %v421_v59 = vsel %vm420_vm3, %v721_v63, %v417_v18  ;;  %v406_v56 = vsub.f32 1.5, %v405_v1  ;;  %v434_v58 = vmul.f32 %v1253_v57, %v433_v21  ;;  %vm449_vm7 = vweird.f32 %v1247_v11  ;;  %vm400_vm10 = vmor %vm398_vm1, %vm399_vm6 }
  0xc9   :  { %v579_v40 = vmul.f32 %v421_v59, %v928_v30  ;;  %v396_v62 = vsub.f32 1.5, %v395_v6  ;;  %v445_v23 = vmul.f32 0.5, %v444_v33  ;;  %v1274_v63 = vadd.f32 1e-05, %v199_v19  ;;  %vm450_vm13 = vmor %vm448_vm2, %vm449_vm7 }
  0xca   :  { %v407_v7 = vmul.f32 %v1226_v10, %v406_v56  ;;  %v1276_v8 = vpop.eup %730  ;;  %v435_v3 = vmul.f32 0.5, %v434_v58  ;;  %vm439_vm9 = vweird.f32 %v1253_v57  ;;  %vm428_vm11 = vweird.f32 %v1240_v55  ;;  %v166_v33 = vpop.xlane.xlu2 %165 }
  0xcb   :  { %v614_v34 = vmul.f32 %v1007_v35, %v579_v40  ;;  %v397_v30 = vmul.f32 %v1231_v2, %v396_v62  ;;  %v446_v14 = vsub.f32 1.5, %v445_v23  ;;  %v423_v4 = vmul.f32 %v1276_v8, %v1240_v55  ;;  %vm440_vm14 = vmor %vm438_vm5, %vm439_vm9  ;;  %v164_v52 = vpop.xlane.xlu1 %163 }
  0xcc   :  { %v411_v17 = vsel %vm410_vm8, %v1226_v10, %v407_v7  ;;  %vm478_vm12 = vweird.f32 %v1242_v41  ;;  %v204_v13 = vmul.f32 %v972_v15, %v160_v20  ;;  %v1295_v9 = vpop.eup %732  ;;  %v436_v5 = vsub.f32 1.5, %v435_v3 }
  0xcd   :  { %646 = vst [vmem:[#allocation7 + $0x88] sm:$0xff] %v614_v34  ;;  %v578_v24 = vmul.f32 %v411_v17, %v930_v31  ;;  %v401_v0 = vsel %vm400_vm10, %v1231_v2, %v397_v30  ;;  %736 = vrsqrt.f32 %v1274_v63  ;;  %v1300_v60 = vpop.eup %734  ;;  %v447_v54 = vmul.f32 %v1247_v11, %v446_v14 }
  0xce   :  { %v577_v25 = vmul.f32 %v401_v0, %v932_v32  ;;  %v424_v10 = vmul.f32 %v1276_v8, %v423_v4  ;;  %v473_v22 = vmul.f32 %v1295_v9, %v1242_v41  ;;  %v437_v31 = vmul.f32 %v1253_v57, %v436_v5 }
  0xcf   :  { %v613_v53 = vmul.f32 %v1007_v35, %v578_v24  ;;  %v463_v39 = vmul.f32 %v1300_v60, %v1245_v46  ;;  %v203_v32 = vmul.f32 %v972_v15, %v158_v61  ;;  %v451_v45 = vsel %vm450_vm13, %v1247_v11, %v447_v54 }
  0xd0   :  { %v612_v2 = vmul.f32 %v1007_v35, %v577_v25  ;;  %v425_v12 = vmul.f32 0.5, %v424_v10  ;;  %v474_v51 = vmul.f32 %v1295_v9, %v473_v22  ;;  %v582_v26 = vmul.f32 %v451_v45, %v940_v36 }
  0xd1   :  { %645 = vst [vmem:[#allocation7 + $0x80] sm:$0xff] %v613_v53  ;;  %v441_v47 = vsel %vm440_vm14, %v1253_v57, %v437_v31  ;;  %vm429_vm15 = vweird.f32 %v1276_v8  ;;  %v464_v27 = vmul.f32 %v1300_v60, %v463_v39  ;;  %vm479_vm0 = vweird.f32 %v1295_v9  ;;  %v162_v57 = vpop.xlane.xlu0 %161 }
  0xd2   :  { %644 = vst [vmem:[#allocation7 + $0x78] sm:$0xff] %v612_v2  ;;  %v581_v28 = vmul.f32 %v441_v47, %v942_v37  ;;  %v426_v11 = vsub.f32 1.5, %v425_v12  ;;  %v475_v50 = vmul.f32 0.5, %v474_v51  ;;  %v617_v1 = vmul.f32 %v1007_v35, %v582_v26  ;;  %vm430_vm1 = vmor %vm428_vm11, %vm429_vm15 }
  0xd3   :  { %v737_v18 = vpop.eup %736  ;;  %v465_v29 = vmul.f32 0.5, %v464_v27  ;;  %v1330_v19 = vadd.f32 1e-05, %v204_v13  ;;  %v1332_v36 = vadd.f32 1e-05, %v203_v32  ;;  %vm468_vm2 = vweird.f32 %v1245_v46  ;;  %vm480_vm4 = vmor %vm478_vm12, %vm479_vm0  ;;  %v170_v5 = vpop.xlane.xlu1 %169 }
  0xd4   :  { %v616_v6 = vmul.f32 %v1007_v35, %v581_v28  ;;  %v427_v21 = vmul.f32 %v1276_v8, %v426_v11  ;;  %v476_v59 = vsub.f32 1.5, %v475_v50  ;;  %v453_v37 = vmul.f32 %v737_v18, %v1274_v63  ;;  %649 = vst [vmem:[#allocation7 + $0xa0] sm:$0xff] %v617_v1 }
  0xd5   :  { %v466_v56 = vsub.f32 1.5, %v465_v29  ;;  %vm469_vm3 = vweird.f32 %v1300_v60  ;;  %738 = vrsqrt.f32 %v1330_v19  ;;  %vm459_vm5 = vweird.f32 %v737_v18 }
  0xd6   :  { %648 = vst [vmem:[#allocation7 + $0x98] sm:$0xff] %v616_v6  ;;  %v431_v61 = vsel %vm430_vm1, %v1276_v8, %v427_v21  ;;  %v477_v40 = vmul.f32 %v1295_v9, %v476_v59  ;;  %v454_v62 = vmul.f32 %v737_v18, %v453_v37  ;;  %740 = vrsqrt.f32 %v1332_v36  ;;  %vm470_vm6 = vmor %vm468_vm2, %vm469_vm3 }
  0xd7   :  { %v580_v58 = vmul.f32 %v431_v61, %v944_v38  ;;  %v467_v55 = vmul.f32 %v1300_v60, %v466_v56  ;;  %v202_v20 = vmul.f32 %v972_v15, %v1270_v16  ;;  %v207_v8 = vmul.f32 %v972_v15, %v166_v33 }
  0xd8   :  { %v481_v7 = vsel %vm480_vm4, %v1295_v9, %v477_v40  ;;  %v455_v23 = vmul.f32 0.5, %v454_v62  ;;  %v206_v38 = vmul.f32 %v972_v15, %v164_v52  ;;  %v205_v9 = vmul.f32 %v972_v15, %v162_v57 }
  0xd9   :  { %v615_v34 = vmul.f32 %v1007_v35, %v580_v58  ;;  %v585_v41 = vmul.f32 %v481_v7, %v952_v42  ;;  %v471_v30 = vsel %vm470_vm6, %v1300_v60, %v467_v55  ;;  %v1363_v3 = vadd.f32 1e-05, %v202_v20  ;;  %v168_v25 = vpop.xlane.xlu0 %167 }
  0xda   :  { %v584_v16 = vmul.f32 %v471_v30, %v954_v43  ;;  %v456_v17 = vsub.f32 1.5, %v455_v23  ;;  %v1366_v14 = vadd.f32 1e-05, %v207_v8  ;;  %v1368_v46 = vadd.f32 1e-05, %v206_v38  ;;  %v754_v30 = vld [vmem:[#allocation2 + $0xc0] sm:$0xff] }
  0xdb   :  { %v739_v4 = vpop.eup %738  ;;  %647 = vst [vmem:[#allocation7 + $0x90] sm:$0xff] %v615_v34  ;;  %v620_v13 = vmul.f32 %v1007_v35, %v585_v41  ;;  %742 = vrsqrt.f32 %v1363_v3  ;;  %vm458_vm7 = vweird.f32 %v1274_v63  ;;  %v1381_v63 = vadd.f32 1e-05, %v205_v9 }
  0xdc   :  { %v741_v42 = vpop.eup %740  ;;  %v619_v24 = vmul.f32 %v1007_v35, %v584_v16  ;;  %v457_v0 = vmul.f32 %v737_v18, %v456_v17  ;;  %v503_v43 = vmul.f32 %v739_v4, %v1330_v19  ;;  %vm460_vm8 = vmor %vm458_vm7, %vm459_vm5  ;;  %744 = vrsqrt.f32 %v1366_v14 }
  0xdd   :  { %652 = vst [vmem:[#allocation7 + $0xb8] sm:$0xff] %v620_v13  ;;  %v493_v60 = vmul.f32 %v741_v42, %v1332_v36  ;;  %746 = vrsqrt.f32 %v1368_v46  ;;  %v209_v31 = vmul.f32 %v972_v15, %v170_v5  ;;  %v208_v32 = vmul.f32 %v972_v15, %v168_v25  ;;  %v756_v5 = vld [vmem:[#allocation2 + $0xe0] sm:$0xff] }
  0xde   :  { %651 = vst [vmem:[#allocation7 + $0xb0] sm:$0xff] %v619_v24  ;;  %v461_v54 = vsel %vm460_vm8, %v737_v18, %v457_v0  ;;  %v504_v10 = vmul.f32 %v739_v4, %v503_v43  ;;  %vm508_vm9 = vweird.f32 %v1330_v19  ;;  %748 = vrsqrt.f32 %v1381_v63  ;;  %v755_v24 = vld [vmem:[#allocation2 + $0xe8] sm:$0xff] }
  0xdf   :  { %v583_v22 = vmul.f32 %v461_v54, %v956_v44  ;;  %v494_v53 = vmul.f32 %v741_v42, %v493_v60  ;;  %vm509_vm10 = vweird.f32 %v739_v4  ;;  %v1389_v26 = vadd.f32 1e-05, %v209_v31 }
  0xe0   :  { %v505_v39 = vmul.f32 0.5, %v504_v10  ;;  %vm499_vm11 = vweird.f32 %v741_v42  ;;  %v1391_v28 = vadd.f32 1e-05, %v208_v32  ;;  %vm498_vm12 = vweird.f32 %v1332_v36  ;;  %vm510_vm13 = vmor %vm508_vm9, %vm509_vm10 }
  0xe1   :  { %v743_v2 = vpop.eup %742  ;;  %v618_v45 = vmul.f32 %v1007_v35, %v583_v22  ;;  %v495_v12 = vmul.f32 0.5, %v494_v53  ;;  %vm488_vm14 = vweird.f32 %v1363_v3  ;;  %750 = vrsqrt.f32 %v1389_v26  ;;  %vm500_vm15 = vmor %vm498_vm12, %vm499_vm11 }
  0xe2   :  { %v506_v51 = vsub.f32 1.5, %v505_v39  ;;  %v483_v44 = vmul.f32 %v743_v2, %v1363_v3  ;;  %v745_v47 = vpop.eup %744  ;;  %vm489_vm0 = vweird.f32 %v743_v2  ;;  %752 = vrsqrt.f32 %v1391_v28  ;;  %v757_v39 = vld [vmem:[#allocation2 + $0xd8] sm:$0xff] }
  0xe3   :  { %650 = vst [vmem:[#allocation7 + $0xa8] sm:$0xff] %v618_v45  ;;  %v496_v27 = vsub.f32 1.5, %v495_v12  ;;  %v747_v15 = vpop.eup %746  ;;  %v533_v52 = vmul.f32 %v745_v47, %v1366_v14  ;;  %vm538_vm1 = vweird.f32 %v1366_v14  ;;  %vm539_vm2 = vweird.f32 %v745_v47  ;;  %vm490_vm3 = vmor %vm488_vm14, %vm489_vm0 }
  0xe4   :  { %v507_v11 = vmul.f32 %v739_v4, %v506_v51  ;;  %v484_v50 = vmul.f32 %v743_v2, %v483_v44  ;;  %v523_v1 = vmul.f32 %v747_v15, %v1368_v46  ;;  %v749_v21 = vpop.eup %748  ;;  %vm529_vm4 = vweird.f32 %v747_v15  ;;  %vm540_vm5 = vmor %vm538_vm1, %vm539_vm2  ;;  %v758_v44 = vld [vmem:[#allocation2 + $0xf8] sm:$0xff] }
  0xe5   :  { %v497_v18 = vmul.f32 %v741_v42, %v496_v27  ;;  %v534_v6 = vmul.f32 %v745_v47, %v533_v52  ;;  %v513_v61 = vmul.f32 %v749_v21, %v1381_v63  ;;  %vm528_vm6 = vweird.f32 %v1368_v46 }
  0xe6   :  { %v511_v29 = vsel %vm510_vm13, %v739_v4, %v507_v11  ;;  %v485_v57 = vmul.f32 0.5, %v484_v50  ;;  %v524_v37 = vmul.f32 %v747_v15, %v523_v1  ;;  %vm519_vm7 = vweird.f32 %v749_v21  ;;  %vm530_vm8 = vmor %vm528_vm6, %vm529_vm4 }
  0xe7   :  { %v588_v36 = vmul.f32 %v511_v29, %v964_v48  ;;  %v501_v59 = vsel %vm500_vm15, %v741_v42, %v497_v18  ;;  %v535_v33 = vmul.f32 0.5, %v534_v6  ;;  %v514_v20 = vmul.f32 %v749_v21, %v513_v61  ;;  %v751_v7 = vpop.eup %750 }
  0xe8   :  { %v587_v19 = vmul.f32 %v501_v59, %v966_v49  ;;  %v486_v56 = vsub.f32 1.5, %v485_v57  ;;  %v525_v62 = vmul.f32 0.5, %v524_v37  ;;  %v553_v34 = vmul.f32 %v751_v7, %v1389_v26  ;;  %v753_v41 = vpop.eup %752 }
  0xe9   :  { %v623_v40 = vmul.f32 %v1007_v35, %v588_v36  ;;  %v536_v48 = vsub.f32 1.5, %v535_v33  ;;  %v515_v38 = vmul.f32 0.5, %v514_v20  ;;  %v543_v9 = vmul.f32 %v753_v41, %v1391_v28 }
  0xea   :  { %v622_v58 = vmul.f32 %v1007_v35, %v587_v19  ;;  %v487_v55 = vmul.f32 %v743_v2, %v486_v56  ;;  %v526_v49 = vsub.f32 1.5, %v525_v62  ;;  %v554_v13 = vmul.f32 %v751_v7, %v553_v34 }
  0xeb   :  { %655 = vst [vmem:[#allocation7 + $0xd0] sm:$0xff] %v623_v40  ;;  %v537_v8 = vmul.f32 %v745_v47, %v536_v48  ;;  %v516_v4 = vsub.f32 1.5, %v515_v38  ;;  %vm518_vm9 = vweird.f32 %v1381_v63  ;;  %v544_v54 = vmul.f32 %v753_v41, %v543_v9 }
  0xec   :  { %654 = vst [vmem:[#allocation7 + $0xc8] sm:$0xff] %v622_v58  ;;  %v491_v23 = vsel %vm490_vm3, %v743_v2, %v487_v55  ;;  %v527_v17 = vmul.f32 %v747_v15, %v526_v49  ;;  %v555_v25 = vmul.f32 0.5, %v554_v13  ;;  %vm520_vm10 = vmor %vm518_vm9, %vm519_vm7  ;;  %vm559_vm11 = vweird.f32 %v751_v7 }
  0xed   :  { %v586_v16 = vmul.f32 %v754_v30, %v491_v23  ;;  %v541_v3 = vsel %vm540_vm5, %v745_v47, %v537_v8  ;;  %v517_v60 = vmul.f32 %v749_v21, %v516_v4  ;;  %v545_v31 = vmul.f32 0.5, %v544_v54 }
  0xee   :  { %v591_v0 = vmul.f32 %v755_v24, %v541_v3  ;;  %v531_v43 = vsel %vm530_vm8, %v747_v15, %v527_v17  ;;  %v556_v53 = vsub.f32 1.5, %v555_v25  ;;  %vm558_vm12 = vweird.f32 %v1389_v26  ;;  %v759_v15 = vld [vmem:[#allocation2 + $0xf0] sm:$0xff] }
  0xef   :  { %v621_v42 = vmul.f32 %v1007_v35, %v586_v16  ;;  %v590_v14 = vmul.f32 %v756_v5, %v531_v43  ;;  %v521_v22 = vsel %vm520_vm10, %v749_v21, %v517_v60  ;;  %v546_v2 = vsub.f32 1.5, %v545_v31  ;;  %vm560_vm14 = vmor %vm558_vm12, %vm559_vm11 }
  0xf0   :  { %v626_v46 = vmul.f32 %v1007_v35, %v591_v0  ;;  %v589_v32 = vmul.f32 %v757_v39, %v521_v22  ;;  %v557_v63 = vmul.f32 %v751_v7, %v556_v53  ;;  %vm549_vm13 = vweird.f32 %v753_v41 }
  0xf1   :  { %653 = vst [vmem:[#allocation7 + $0xc0] sm:$0xff] %v621_v42  ;;  %v625_v10 = vmul.f32 %v1007_v35, %v590_v14  ;;  %v547_v51 = vmul.f32 %v753_v41, %v546_v2  ;;  %vm548_vm15 = vweird.f32 %v1391_v28 }
  0xf2   :  { %658 = vst [vmem:[#allocation7 + $0xe8] sm:$0xff] %v626_v46  ;;  %v624_v45 = vmul.f32 %v1007_v35, %v589_v32  ;;  %v561_v12 = vsel %vm560_vm14, %v751_v7, %v557_v63  ;;  %vm550_vm0 = vmor %vm548_vm15, %vm549_vm13 }
  0xf3   :  { %657 = vst [vmem:[#allocation7 + $0xe0] sm:$0xff] %v625_v10  ;;  %v593_v47 = vmul.f32 %v758_v44, %v561_v12  ;;  %v551_v27 = vsel %vm550_vm0, %v753_v41, %v547_v51 }
  0xf4   :  { %656 = vst [vmem:[#allocation7 + $0xd8] sm:$0xff] %v624_v45  ;;  %v592_v11 = vmul.f32 %v759_v15, %v551_v27 }
  0xf5   :  { %v628_v26 = vmul.f32 %v1007_v35, %v593_v47 }
  0xf6   :  { %v627_v50 = vmul.f32 %v1007_v35, %v592_v11 }
  0xf7   :  { %660 = vst [vmem:[#allocation7 + $0xf8] sm:$0xff] %v628_v26 }
  0xf8   :  { %659 = vst [vmem:[#allocation7 + $0xf0] sm:$0xff] %v627_v50 }
  0xf9   :  { %673 = dma.vmem_to_hbm [thread:$0]  %s666_s1, 4096, %s668_s23, [#allocation4], %s839_s17, %s839_s17, %s840_s18  }
  0xfa   :  { %836 = dma.done.wait [#allocation4], 4096  }
  0xfb   :  { %837 = vsyncadd [#allocation4], 4294963200 }
  0xfc   :  { %678 = vsyncpa [#allocation3], 1 }
  0xfd   :  { %679 = vsyncpa [#allocation6], 1 }
  0xfe   :  { %680 = vsyncpa [#allocation4], 1 }

</bundles_post_ra>
